<compile_context>
chip_gen: v6e
topology: v6e:2x2x1
jax: 0.10.0
libtpu: 0.0.40
codegen_flags: <defaults>
</compile_context>

<pallas_src>
import functools

import jax
import jax.numpy as jnp
from jax.experimental import pallas as pl
from jax.experimental.pallas import tpu as pltpu


# ------------------------------ sizing helpers ------------------------------

def _round_up(n, m):
    return ((n + m - 1) // m) * m


def _pick_tile(n, candidates):
    """Largest candidate tile that evenly divides n, else the full extent."""
    for c in candidates:
        if n >= c and n % c == 0:
            return c
    return n


@functools.lru_cache(maxsize=None)
def _vmem_budget():
    """Generation-aware scoped-VMEM budget: ~3/4 of physical VMEM.
    128 MiB parts (v5e/v6e) -> 96 MiB; 64 MiB parts (v7x) -> 48 MiB."""
    try:
        cap = int(pltpu.get_tpu_info().vmem_capacity_bytes)
    except Exception:
        cap = 64 * 1024 * 1024          # conservative fallback, safe on all gens
    return min((cap * 3) // 4, 100 * 1024 * 1024)


# ----------------------------- in-kernel helpers -----------------------------

def _layernorm(x, scale, shift, eps=1e-5):
    # x: (rows, D); scale/shift: (1, D). unbiased=False variance (matches reference).
    mean = jnp.mean(x, axis=-1, keepdims=True)
    var = jnp.mean((x - mean) ** 2, axis=-1, keepdims=True)
    xn = (x - mean) * jax.lax.rsqrt(var + eps)
    return xn * scale + shift


def _gelu_tanh(x):
    # 0.5*x*(1 + tanh(sqrt(2/pi)*(x + 0.044715*x^3)))  (matches reference GELU)
    c = jnp.float32(0.7978845608028654)
    return 0.5 * x * (1.0 + jnp.tanh(c * (x + 0.044715 * x * x * x)))


# ------------------- kernel 1: LN1 + fused QKV projection -------------------
# grid (B, row tiles); writes q/k/v in (B, H, T, head_dim) bf16 layout so the
# attention / out-proj kernels slice heads with BlockSpec only (no relayouts).

def _qkv_kernel(x_ref, ln_s_ref, ln_b_ref, wqkv_ref, q_ref, k_ref, v_ref):
    x = x_ref[0]                                        # (TR, D) f32
    D = x.shape[1]
    H = q_ref.shape[1]
    hd = q_ref.shape[3]

    xn = _layernorm(x, ln_s_ref[...], ln_b_ref[...])
    qkv = jnp.dot(xn.astype(jnp.bfloat16), wqkv_ref[...],
                  preferred_element_type=jnp.float32)   # (TR, 3D) f32 (MXU)
    qkv = qkv.astype(jnp.bfloat16)

    # one-time head split (static lane slices stored straight to the outputs)
    for h in range(H):
        base = h * hd
        q_ref[0, h] = qkv[:, base:base + hd]
        k_ref[0, h] = qkv[:, D + base:D + base + hd]
        v_ref[0, h] = qkv[:, 2 * D + base:2 * D + base + hd]


def qkv_project(x, p, *, n_heads):
    B, T, D = x.shape
    hd = D // n_heads
    TRQ = _pick_tile(T, (256, 128, 64, 32, 16, 8))
    budget = _vmem_budget()
    head_shape = jax.ShapeDtypeStruct((B, n_heads, T, hd), jnp.bfloat16)
    head_spec = pl.BlockSpec((1, n_heads, TRQ, hd), lambda b, r: (b, 0, r, 0))
    return pl.pallas_call(
        _qkv_kernel,
        out_shape=(head_shape, head_shape, head_shape),
        grid=(B, T // TRQ),
        in_specs=[
            pl.BlockSpec((1, TRQ, D), lambda b, r: (b, r, 0)),
            pl.BlockSpec((1, D), lambda b, r: (0, 0)),
            pl.BlockSpec((1, D), lambda b, r: (0, 0)),
            pl.BlockSpec((D, 3 * D), lambda b, r: (0, 0)),   # fused Wqkv (bf16)
        ],
        out_specs=(head_spec, head_spec, head_spec),
        compiler_params=pltpu.CompilerParams(
            dimension_semantics=("parallel", "parallel"),
            vmem_limit_bytes=budget),
    )(x, p["ln1_scale"], p["ln1_shift"], p["wqkv"])


# --------------------- kernel 2: flash causal attention ---------------------
# grid (B, H, q tiles, kv tiles); kv axis is the (innermost) "arbitrary"
# reduction with online-softmax state in VMEM scratch.

def _flash_attn_kernel(q_ref, k_ref, v_ref, o_ref, m_sc, l_sc, acc_sc):
    tq = q_ref.shape[2]
    tkv = k_ref.shape[2]
    qi = pl.program_id(2)
    ki = pl.program_id(3)

    @pl.when(ki == 0)
    def _():
        m_sc[...] = jnp.full(m_sc.shape, -jnp.inf, m_sc.dtype)
        l_sc[...] = jnp.zeros(l_sc.shape, l_sc.dtype)
        acc_sc[...] = jnp.zeros(acc_sc.shape, acc_sc.dtype)

    # skip KV tiles that lie entirely above the causal diagonal
    @pl.when(ki * tkv <= qi * tq + (tq - 1))
    def _():
        q = q_ref[0, 0]                                  # (TQ, hd) bf16 (pre-scaled)
        k = k_ref[0, 0]                                  # (TKV, hd) bf16
        v = v_ref[0, 0]                                  # (TKV, hd) bf16
        s = jax.lax.dot_general(q, k, (((1,), (1,)), ((), ())),
                                preferred_element_type=jnp.float32)  # (TQ, TKV)
        row = qi * tq + jax.lax.broadcasted_iota(jnp.int32, (tq, tkv), 0)
        col = ki * tkv + jax.lax.broadcasted_iota(jnp.int32, (tq, tkv), 1)
        s = jnp.where(col > row, -jnp.inf, s)

        m_prev = m_sc[...]
        m_new = jnp.maximum(m_prev, jnp.max(s, axis=-1, keepdims=True))
        alpha = jnp.exp(m_prev - m_new)
        p = jnp.exp(s - m_new)
        l_sc[...] = alpha * l_sc[...] + jnp.sum(p, axis=-1, keepdims=True)
        acc_sc[...] = alpha * acc_sc[...] + jnp.dot(
            p.astype(jnp.bfloat16), v, preferred_element_type=jnp.float32)
        m_sc[...] = m_new

    @pl.when(ki == pl.num_programs(3) - 1)
    def _():
        # normalize AFTER the PV matmul (on (TQ, hd), not (TQ, TKV))
        inv_l = pl.reciprocal(l_sc[...], approx=True)
        o_ref[0, 0] = (acc_sc[...] * inv_l).astype(o_ref.dtype)


def flash_attention(q, k, v):
    B, H, T, hd = q.shape
    TQ = _pick_tile(T, (256, 128, 64, 32, 16, 8))
    TKV = _pick_tile(T, (256, 128, 64, 32, 16, 8))
    budget = _vmem_budget()
    return pl.pallas_call(
        _flash_attn_kernel,
        out_shape=jax.ShapeDtypeStruct((B, H, T, hd), jnp.bfloat16),
        grid=(B, H, T // TQ, T // TKV),
        in_specs=[
            pl.BlockSpec((1, 1, TQ, hd), lambda b, h, qi, ki: (b, h, qi, 0)),
            pl.BlockSpec((1, 1, TKV, hd), lambda b, h, qi, ki: (b, h, ki, 0)),
            pl.BlockSpec((1, 1, TKV, hd), lambda b, h, qi, ki: (b, h, ki, 0)),
        ],
        out_specs=pl.BlockSpec((1, 1, TQ, hd), lambda b, h, qi, ki: (b, h, qi, 0)),
        scratch_shapes=[pltpu.VMEM((TQ, 1), jnp.float32),    # m (running max)
                        pltpu.VMEM((TQ, 1), jnp.float32),    # l (running denom)
                        pltpu.VMEM((TQ, hd), jnp.float32)],  # acc (unnormalized ctx)
        compiler_params=pltpu.CompilerParams(
            dimension_semantics=("parallel", "parallel", "parallel", "arbitrary"),
            vmem_limit_bytes=budget),
    )(q, k, v)


# ------------- kernel 3: attention output projection + residual 1 -------------
# grid (B, row tiles, H); H is a reduction axis: out_proj(concat_h ctx_h)
# == sum_h ctx_h @ Wo[h*hd:(h+1)*hd, :], accumulated into the resident output.

def _out_proj_kernel(ctx_ref, wo_ref, x_ref, bo_ref, o_ref):
    h = pl.program_id(2)
    part = jnp.dot(ctx_ref[0, 0], wo_ref[...],
                   preferred_element_type=jnp.float32)      # (TR, D)

    @pl.when(h == 0)
    def _():
        o_ref[0] = x_ref[0] + bo_ref[...] + part            # residual 1 + bias

    @pl.when(h > 0)
    def _():
        o_ref[0] = o_ref[0] + part


def attn_out_proj(ctx, x, p):
    B, H, T, hd = ctx.shape
    D = x.shape[-1]
    TRO = _pick_tile(T, (256, 128, 64, 32, 16, 8))
    budget = _vmem_budget()
    return pl.pallas_call(
        _out_proj_kernel,
        out_shape=jax.ShapeDtypeStruct((B, T, D), jnp.float32),
        grid=(B, T // TRO, H),
        in_specs=[
            pl.BlockSpec((1, 1, TRO, hd), lambda b, r, h: (b, h, r, 0)),  # ctx head h
            pl.BlockSpec((hd, D), lambda b, r, h: (h, 0)),                # Wo rows of h
            pl.BlockSpec((1, TRO, D), lambda b, r, h: (b, r, 0)),         # residual in
            pl.BlockSpec((1, D), lambda b, r, h: (0, 0)),                 # bo
        ],
        out_specs=pl.BlockSpec((1, TRO, D), lambda b, r, h: (b, r, 0)),
        compiler_params=pltpu.CompilerParams(
            dimension_semantics=("parallel", "parallel", "arbitrary"),
            vmem_limit_bytes=budget),
    )(ctx, p["wo"], x, p["bo"])


# ---------------- kernel 4: LN2 + FFN (GELU MLP) + residual 2 ----------------
# grid (row tiles over B*T, Dff reduction tiles).  On 128-MiB VMEM parts the
# Dff axis collapses to a single full-Dff step (weights resident, TR=512).

def _ffn_kernel(x_ref, ln2_s_ref, ln2_b_ref, w1_ref, b1_ref, w2_ref, b2_ref, o_ref,
                x2_scratch, acc_scratch):
    f = pl.program_id(1)

    @pl.when(f == 0)
    def _():
        x2 = _layernorm(x_ref[...], ln2_s_ref[...], ln2_b_ref[...])
        x2_scratch[...] = x2.astype(jnp.bfloat16)
        acc_scratch[...] = jnp.zeros(acc_scratch.shape, acc_scratch.dtype)

    hdn = jnp.dot(x2_scratch[...], w1_ref[...],
                  preferred_element_type=jnp.float32) + b1_ref[...]   # (TR, TF)
    hdn = _gelu_tanh(hdn)
    acc_scratch[...] += jnp.dot(hdn.astype(jnp.bfloat16), w2_ref[...],
                                preferred_element_type=jnp.float32)   # (TR, D)

    @pl.when(f == pl.num_programs(1) - 1)
    def _():
        o_ref[...] = x_ref[...] + acc_scratch[...] + b2_ref[...]      # residual 2


def ffn_block(x, p):
    B, T, D = x.shape
    Dff = p["w1"].shape[1]
    R = B * T
    x2d = x.reshape(R, D)
    budget = _vmem_budget()
    if 8 * D * Dff <= budget // 3:
        # v5e/v6e-class budget: resident full-Dff weights, no reduction loop
        TF = Dff
        TR = _pick_tile(R, (512, 256, 128, 64, 32, 16, 8))
    else:
        # v7x-class budget: keep the Dff reduction tiled
        TF = _pick_tile(Dff, (512, 256, 128))
        TR = _pick_tile(R, (256, 128, 64, 32, 16, 8))
    out = pl.pallas_call(
        _ffn_kernel,
        out_shape=jax.ShapeDtypeStruct((R, D), jnp.float32),
        grid=(R // TR, Dff // TF),
        in_specs=[
            pl.BlockSpec((TR, D), lambda r, f: (r, 0)),   # x (post-attention)
            pl.BlockSpec((1, D), lambda r, f: (0, 0)),    # ln2 scale
            pl.BlockSpec((1, D), lambda r, f: (0, 0)),    # ln2 shift
            pl.BlockSpec((D, TF), lambda r, f: (0, f)),   # W1 tile (bf16)
            pl.BlockSpec((1, TF), lambda r, f: (0, f)),   # b1 tile
            pl.BlockSpec((TF, D), lambda r, f: (f, 0)),   # W2 tile (bf16)
            pl.BlockSpec((1, D), lambda r, f: (0, 0)),    # b2
        ],
        out_specs=pl.BlockSpec((TR, D), lambda r, f: (r, 0)),
        scratch_shapes=[pltpu.VMEM((TR, D), jnp.bfloat16),   # cached LN2(x)
                        pltpu.VMEM((TR, D), jnp.float32)],   # f32 accumulator
        compiler_params=pltpu.CompilerParams(
            dimension_semantics=("parallel", "arbitrary"),
            vmem_limit_bytes=budget),
    )(x2d, p["ln2_scale"], p["ln2_shift"], p["w1"], p["b1"], p["w2"], p["b2"])
    return out.reshape(B, T, D)


# --------------------- kernel 5: final LN + LM head ---------------------
# vocab axis OUTER (each padded, lane-dense W_out tile streamed from HBM once);
# LN is recomputed per vocab tile (cheap next to the matmul).

def _head_kernel(x_ref, ln_s_ref, ln_b_ref, w_ref, o_ref):
    xn = _layernorm(x_ref[...], ln_s_ref[...], ln_b_ref[...])
    # TODO(synk): emit bf16 logits here if downstream tolerates it (halves writeback).
    o_ref[...] = jnp.dot(xn.astype(jnp.bfloat16), w_ref[...],
                         preferred_element_type=jnp.float32)


def lm_head(x, ln_scale, ln_shift, w_out, vocab_size):
    B, T, D = x.shape
    V_pad = w_out.shape[1]
    R = B * T
    x2d = x.reshape(R, D)
    budget = _vmem_budget()
    tv_cands = (2048, 1024, 512, 256, 128) if budget >= 80 * 1024 * 1024 \
        else (1024, 512, 256, 128)
    TV = _pick_tile(V_pad, tv_cands)
    TR = _pick_tile(R, (512, 256, 128, 64, 32, 16, 8))
    out = pl.pallas_call(
        _head_kernel,
        out_shape=jax.ShapeDtypeStruct((R, V_pad), jnp.float32),
        grid=(V_pad // TV, R // TR),              # vocab OUTER, rows inner
        in_specs=[
            pl.BlockSpec((TR, D), lambda v, r: (r, 0)),
            pl.BlockSpec((1, D), lambda v, r: (0, 0)),
            pl.BlockSpec((1, D), lambda v, r: (0, 0)),
            pl.BlockSpec((D, TV), lambda v, r: (0, v)),   # W_out tile (bf16, resident over r)
        ],
        out_specs=pl.BlockSpec((TR, TV), lambda v, r: (r, v)),
        compiler_params=pltpu.CompilerParams(
            dimension_semantics=("parallel", "parallel"),
            vmem_limit_bytes=budget),
    )(x2d, ln_scale, ln_shift, w_out)
    return out[:, :vocab_size].reshape(B, T, vocab_size)


# --------------------------------- model glue ---------------------------------

def init_params(cfg, key):
    D = cfg["emb_dim"]
    V = cfg["vocab_size"]
    C = cfg["context_length"]
    H = cfg["n_heads"]
    hd = D // H
    Dff = 4 * D
    # pad vocab so the LM head uses large lane-dense tiles (e.g. 50257 -> 51200)
    V_pad = _round_up(V, 2048) if V >= 2048 else _round_up(V, 128)

    ks = iter(jax.random.split(key, 3 + 4 * cfg["n_layers"]))

    def nrm(k, shape):
        return jax.random.normal(k, shape, jnp.float32) * 0.02

    bf16 = jnp.bfloat16
    w_out = jnp.pad(nrm(next(ks), (D, V)), ((0, 0), (0, V_pad - V)))

    params = {
        "tok_emb": nrm(next(ks), (V, D)),
        "pos_emb": nrm(next(ks), (C, D)),
        "ln_scale": jnp.ones((1, D), jnp.float32),
        "ln_shift": jnp.zeros((1, D), jnp.float32),
        "w_out": w_out.astype(bf16),
        "blocks": [],
    }
    for _ in range(cfg["n_layers"]):
        wqkv = nrm(next(ks), (D, 3 * D))
        # fold 1/sqrt(head_dim) attention scale into the Q columns (done once, offline)
        wqkv = wqkv.at[:, :D].multiply(1.0 / (hd ** 0.5))
        blk = {
            "ln1_scale": jnp.ones((1, D), jnp.float32),
            "ln1_shift": jnp.zeros((1, D), jnp.float32),
            "wqkv": wqkv.astype(bf16),                      # fused [Wq | Wk | Wv]
            "wo": nrm(next(ks), (D, D)).astype(bf16),
            "bo": jnp.zeros((1, D), jnp.float32),
            "ln2_scale": jnp.ones((1, D), jnp.float32),
            "ln2_shift": jnp.zeros((1, D), jnp.float32),
            "w1": nrm(next(ks), (D, Dff)).astype(bf16),
            "b1": jnp.zeros((1, Dff), jnp.float32),
            "w2": nrm(next(ks), (Dff, D)).astype(bf16),
            "b2": jnp.zeros((1, D), jnp.float32),
        }
        params["blocks"].append(blk)
    return params


def gpt_forward(tokens, params, cfg):
    B, T = tokens.shape
    assert T <= cfg["context_length"], "sequence length exceeds context_length"
    # embedding gathers (plain JAX glue); dropout is identity (eval mode)
    x = params["tok_emb"][tokens] + params["pos_emb"][jnp.arange(T)]
    for blk in params["blocks"]:
        q, k, v = qkv_project(x, blk, n_heads=cfg["n_heads"])   # LN1 + fused QKV
        ctx = flash_attention(q, k, v)                          # causal online-softmax
        x = attn_out_proj(ctx, x, blk)                          # out_proj + residual 1
        x = ffn_block(x, blk)                                   # LN2 + MLP + residual 2
    return lm_head(x, params["ln_scale"], params["ln_shift"],
                   params["w_out"], cfg["vocab_size"])


if __name__ == "__main__":
    cfg = {
        "vocab_size": 128,
        "context_length": 16,
        "emb_dim": 32,
        "n_heads": 4,
        "n_layers": 2,
        "drop_rate": 0.0,
        "qkv_bias": False,
    }
    key = jax.random.PRNGKey(0)
    kp, kt = jax.random.split(key)
    params = init_params(cfg, kp)
    tokens = jax.random.randint(kt, (2, 8), 0, cfg["vocab_size"], dtype=jnp.int32)

    logits = gpt_forward(tokens, params, cfg)
    jax.block_until_ready(logits)
    assert logits.shape == (2, 8, cfg["vocab_size"])
    assert bool(jnp.all(jnp.isfinite(logits)))
    print("KERNEL_OK")
</pallas_src>

<mosaic_0001>
module attributes {stable_mosaic.version = 11 : i64} {
  func.func @_qkv_kernel(%arg0: i32, %arg1: i32, %arg2: memref<1x8x32xf32, #tpu.memory_space<vmem>>, %arg3: memref<1x32xf32, #tpu.memory_space<vmem>>, %arg4: memref<1x32xf32, #tpu.memory_space<vmem>>, %arg5: memref<32x96xbf16, #tpu.memory_space<vmem>>, %arg6: memref<1x4x8x8xbf16, #tpu.memory_space<vmem>>, %arg7: memref<1x4x8x8xbf16, #tpu.memory_space<vmem>>, %arg8: memref<1x4x8x8xbf16, #tpu.memory_space<vmem>>) attributes {dimension_semantics = [#tpu.dimension_semantics<parallel>, #tpu.dimension_semantics<parallel>], iteration_bounds = array<i64: 2, 1>, scalar_prefetch = 0 : i64, scratch_operands = 0 : i64, tpu.core_type = #tpu.core_type<tc>, window_params = [{transform_indices = @transform_0, window_bounds = array<i64: 1, 8, 32>}, {pipeline_mode = #tpu.pipeline_mode<synchronous>, transform_indices = @transform_1, window_bounds = array<i64: 1, 32>}, {pipeline_mode = #tpu.pipeline_mode<synchronous>, transform_indices = @transform_2, window_bounds = array<i64: 1, 32>}, {pipeline_mode = #tpu.pipeline_mode<synchronous>, transform_indices = @transform_3, window_bounds = array<i64: 32, 96>}, {transform_indices = @transform_4, window_bounds = array<i64: 1, 4, 8, 8>}, {transform_indices = @transform_5, window_bounds = array<i64: 1, 4, 8, 8>}, {transform_indices = @transform_6, window_bounds = array<i64: 1, 4, 8, 8>}]} {
    %c0 = arith.constant 0 : index
    %c0_0 = arith.constant 0 : index
    %c0_1 = arith.constant 0 : index
    %0 = vector.load %arg2[%c0, %c0_0, %c0_1] : memref<1x8x32xf32, #tpu.memory_space<vmem>>, vector<1x8x32xf32>
    %1 = vector.shape_cast %0 : vector<1x8x32xf32> to vector<8x32xf32>
    %c0_2 = arith.constant 0 : index
    %c0_3 = arith.constant 0 : index
    %2 = vector.load %arg3[%c0_2, %c0_3] : memref<1x32xf32, #tpu.memory_space<vmem>>, vector<1x32xf32>
    %c0_4 = arith.constant 0 : index
    %c0_5 = arith.constant 0 : index
    %3 = vector.load %arg4[%c0_4, %c0_5] : memref<1x32xf32, #tpu.memory_space<vmem>>, vector<1x32xf32>
    %cst = arith.constant dense<0.000000e+00> : vector<8xf32>
    %4 = vector.multi_reduction <add>, %1, %cst [1] : vector<8x32xf32> to vector<8xf32>
    %5 = vector.shape_cast %4 : vector<8xf32> to vector<8x1xf32>
    %cst_6 = arith.constant 3.200000e+01 : f32
    %6 = vector.broadcast %cst_6 : f32 to vector<8x1xf32>
    %7 = arith.divf %5, %6 : vector<8x1xf32>
    %8 = vector.broadcast %7 : vector<8x1xf32> to vector<8x32xf32>
    %9 = arith.subf %1, %8 : vector<8x32xf32>
    %10 = arith.mulf %9, %9 : vector<8x32xf32>
    %cst_7 = arith.constant dense<0.000000e+00> : vector<8xf32>
    %11 = vector.multi_reduction <add>, %10, %cst_7 [1] : vector<8x32xf32> to vector<8xf32>
    %12 = vector.shape_cast %11 : vector<8xf32> to vector<8x1xf32>
    %cst_8 = arith.constant 3.200000e+01 : f32
    %13 = vector.broadcast %cst_8 : f32 to vector<8x1xf32>
    %14 = arith.divf %12, %13 : vector<8x1xf32>
    %15 = vector.broadcast %7 : vector<8x1xf32> to vector<8x32xf32>
    %16 = arith.subf %1, %15 : vector<8x32xf32>
    %cst_9 = arith.constant 9.99999974E-6 : f32
    %17 = vector.broadcast %cst_9 : f32 to vector<8x1xf32>
    %18 = arith.addf %14, %17 : vector<8x1xf32>
    %19 = math.rsqrt %18 : vector<8x1xf32>
    %20 = vector.broadcast %19 : vector<8x1xf32> to vector<8x32xf32>
    %21 = arith.mulf %16, %20 : vector<8x32xf32>
    %22 = vector.broadcast %2 : vector<1x32xf32> to vector<8x32xf32>
    %23 = arith.mulf %21, %22 : vector<8x32xf32>
    %24 = vector.broadcast %3 : vector<1x32xf32> to vector<8x32xf32>
    %25 = arith.addf %23, %24 : vector<8x32xf32>
    %26 = arith.truncf %25 : vector<8x32xf32> to vector<8x32xbf16>
    %c0_10 = arith.constant 0 : index
    %c0_11 = arith.constant 0 : index
    %27 = vector.load %arg5[%c0_10, %c0_11] : memref<32x96xbf16, #tpu.memory_space<vmem>>, vector<32x96xbf16>
    %cst_12 = arith.constant dense<0.000000e+00> : vector<8x96xf32>
    %28 = tpu.matmul %26, %27, %cst_12 {dimension_numbers = #tpu.dot_dimension_numbers<[1], [0], [0], [1], [0, 0, 1, 1], [], []>} : vector<8x32xbf16>, vector<32x96xbf16>, vector<8x96xf32> -> vector<8x96xf32>
    %29 = arith.truncf %28 : vector<8x96xf32> to vector<8x96xbf16>
    %30 = vector.extract_strided_slice %29 {offsets = [0, 0], sizes = [8, 8], strides = [1, 1]} : vector<8x96xbf16> to vector<8x8xbf16>
    %c0_13 = arith.constant 0 : index
    %c0_14 = arith.constant 0 : index
    %c0_15 = arith.constant 0 : index
    %c0_16 = arith.constant 0 : index
    %31 = vector.load %arg6[%c0_13, %c0_14, %c0_15, %c0_16] : memref<1x4x8x8xbf16, #tpu.memory_space<vmem>>, vector<1x1x8x8xbf16>
    %32 = vector.shape_cast %31 : vector<1x1x8x8xbf16> to vector<8x8xbf16>
    %33 = vector.shape_cast %30 : vector<8x8xbf16> to vector<1x1x8x8xbf16>
    tpu.vector_store %arg6[%c0_13, %c0_14, %c0_15, %c0_16], %33 {strides = array<i32>} : memref<1x4x8x8xbf16, #tpu.memory_space<vmem>>, vector<1x1x8x8xbf16>,
    %34 = vector.extract_strided_slice %29 {offsets = [0, 32], sizes = [8, 8], strides = [1, 1]} : vector<8x96xbf16> to vector<8x8xbf16>
    %c0_17 = arith.constant 0 : index
    %c0_18 = arith.constant 0 : index
    %c0_19 = arith.constant 0 : index
    %c0_20 = arith.constant 0 : index
    %35 = vector.load %arg7[%c0_17, %c0_18, %c0_19, %c0_20] : memref<1x4x8x8xbf16, #tpu.memory_space<vmem>>, vector<1x1x8x8xbf16>
    %36 = vector.shape_cast %35 : vector<1x1x8x8xbf16> to vector<8x8xbf16>
    %37 = vector.shape_cast %34 : vector<8x8xbf16> to vector<1x1x8x8xbf16>
    tpu.vector_store %arg7[%c0_17, %c0_18, %c0_19, %c0_20], %37 {strides = array<i32>} : memref<1x4x8x8xbf16, #tpu.memory_space<vmem>>, vector<1x1x8x8xbf16>,
    %38 = vector.extract_strided_slice %29 {offsets = [0, 64], sizes = [8, 8], strides = [1, 1]} : vector<8x96xbf16> to vector<8x8xbf16>
    %c0_21 = arith.constant 0 : index
    %c0_22 = arith.constant 0 : index
    %c0_23 = arith.constant 0 : index
    %c0_24 = arith.constant 0 : index
    %39 = vector.load %arg8[%c0_21, %c0_22, %c0_23, %c0_24] : memref<1x4x8x8xbf16, #tpu.memory_space<vmem>>, vector<1x1x8x8xbf16>
    %40 = vector.shape_cast %39 : vector<1x1x8x8xbf16> to vector<8x8xbf16>
    %41 = vector.shape_cast %38 : vector<8x8xbf16> to vector<1x1x8x8xbf16>
    tpu.vector_store %arg8[%c0_21, %c0_22, %c0_23, %c0_24], %41 {strides = array<i32>} : memref<1x4x8x8xbf16, #tpu.memory_space<vmem>>, vector<1x1x8x8xbf16>,
    %42 = vector.extract_strided_slice %29 {offsets = [0, 8], sizes = [8, 8], strides = [1, 1]} : vector<8x96xbf16> to vector<8x8xbf16>
    %c0_25 = arith.constant 0 : index
    %c1 = arith.constant 1 : index
    %c0_26 = arith.constant 0 : index
    %c0_27 = arith.constant 0 : index
    %43 = vector.load %arg6[%c0_25, %c1, %c0_26, %c0_27] : memref<1x4x8x8xbf16, #tpu.memory_space<vmem>>, vector<1x1x8x8xbf16>
    %44 = vector.shape_cast %43 : vector<1x1x8x8xbf16> to vector<8x8xbf16>
    %45 = vector.shape_cast %42 : vector<8x8xbf16> to vector<1x1x8x8xbf16>
    tpu.vector_store %arg6[%c0_25, %c1, %c0_26, %c0_27], %45 {strides = array<i32>} : memref<1x4x8x8xbf16, #tpu.memory_space<vmem>>, vector<1x1x8x8xbf16>,
    %46 = vector.extract_strided_slice %29 {offsets = [0, 40], sizes = [8, 8], strides = [1, 1]} : vector<8x96xbf16> to vector<8x8xbf16>
    %c0_28 = arith.constant 0 : index
    %c1_29 = arith.constant 1 : index
    %c0_30 = arith.constant 0 : index
    %c0_31 = arith.constant 0 : index
    %47 = vector.load %arg7[%c0_28, %c1_29, %c0_30, %c0_31] : memref<1x4x8x8xbf16, #tpu.memory_space<vmem>>, vector<1x1x8x8xbf16>
    %48 = vector.shape_cast %47 : vector<1x1x8x8xbf16> to vector<8x8xbf16>
    %49 = vector.shape_cast %46 : vector<8x8xbf16> to vector<1x1x8x8xbf16>
    tpu.vector_store %arg7[%c0_28, %c1_29, %c0_30, %c0_31], %49 {strides = array<i32>} : memref<1x4x8x8xbf16, #tpu.memory_space<vmem>>, vector<1x1x8x8xbf16>,
    %50 = vector.extract_strided_slice %29 {offsets = [0, 72], sizes = [8, 8], strides = [1, 1]} : vector<8x96xbf16> to vector<8x8xbf16>
    %c0_32 = arith.constant 0 : index
    %c1_33 = arith.constant 1 : index
    %c0_34 = arith.constant 0 : index
    %c0_35 = arith.constant 0 : index
    %51 = vector.load %arg8[%c0_32, %c1_33, %c0_34, %c0_35] : memref<1x4x8x8xbf16, #tpu.memory_space<vmem>>, vector<1x1x8x8xbf16>
    %52 = vector.shape_cast %51 : vector<1x1x8x8xbf16> to vector<8x8xbf16>
    %53 = vector.shape_cast %50 : vector<8x8xbf16> to vector<1x1x8x8xbf16>
    tpu.vector_store %arg8[%c0_32, %c1_33, %c0_34, %c0_35], %53 {strides = array<i32>} : memref<1x4x8x8xbf16, #tpu.memory_space<vmem>>, vector<1x1x8x8xbf16>,
    %54 = vector.extract_strided_slice %29 {offsets = [0, 16], sizes = [8, 8], strides = [1, 1]} : vector<8x96xbf16> to vector<8x8xbf16>
    %c0_36 = arith.constant 0 : index
    %c2 = arith.constant 2 : index
    %c0_37 = arith.constant 0 : index
    %c0_38 = arith.constant 0 : index
    %55 = vector.load %arg6[%c0_36, %c2, %c0_37, %c0_38] : memref<1x4x8x8xbf16, #tpu.memory_space<vmem>>, vector<1x1x8x8xbf16>
    %56 = vector.shape_cast %55 : vector<1x1x8x8xbf16> to vector<8x8xbf16>
    %57 = vector.shape_cast %54 : vector<8x8xbf16> to vector<1x1x8x8xbf16>
    tpu.vector_store %arg6[%c0_36, %c2, %c0_37, %c0_38], %57 {strides = array<i32>} : memref<1x4x8x8xbf16, #tpu.memory_space<vmem>>, vector<1x1x8x8xbf16>,
    %58 = vector.extract_strided_slice %29 {offsets = [0, 48], sizes = [8, 8], strides = [1, 1]} : vector<8x96xbf16> to vector<8x8xbf16>
    %c0_39 = arith.constant 0 : index
    %c2_40 = arith.constant 2 : index
    %c0_41 = arith.constant 0 : index
    %c0_42 = arith.constant 0 : index
    %59 = vector.load %arg7[%c0_39, %c2_40, %c0_41, %c0_42] : memref<1x4x8x8xbf16, #tpu.memory_space<vmem>>, vector<1x1x8x8xbf16>
    %60 = vector.shape_cast %59 : vector<1x1x8x8xbf16> to vector<8x8xbf16>
    %61 = vector.shape_cast %58 : vector<8x8xbf16> to vector<1x1x8x8xbf16>
    tpu.vector_store %arg7[%c0_39, %c2_40, %c0_41, %c0_42], %61 {strides = array<i32>} : memref<1x4x8x8xbf16, #tpu.memory_space<vmem>>, vector<1x1x8x8xbf16>,
    %62 = vector.extract_strided_slice %29 {offsets = [0, 80], sizes = [8, 8], strides = [1, 1]} : vector<8x96xbf16> to vector<8x8xbf16>
    %c0_43 = arith.constant 0 : index
    %c2_44 = arith.constant 2 : index
    %c0_45 = arith.constant 0 : index
    %c0_46 = arith.constant 0 : index
    %63 = vector.load %arg8[%c0_43, %c2_44, %c0_45, %c0_46] : memref<1x4x8x8xbf16, #tpu.memory_space<vmem>>, vector<1x1x8x8xbf16>
    %64 = vector.shape_cast %63 : vector<1x1x8x8xbf16> to vector<8x8xbf16>
    %65 = vector.shape_cast %62 : vector<8x8xbf16> to vector<1x1x8x8xbf16>
    tpu.vector_store %arg8[%c0_43, %c2_44, %c0_45, %c0_46], %65 {strides = array<i32>} : memref<1x4x8x8xbf16, #tpu.memory_space<vmem>>, vector<1x1x8x8xbf16>,
    %66 = vector.extract_strided_slice %29 {offsets = [0, 24], sizes = [8, 8], strides = [1, 1]} : vector<8x96xbf16> to vector<8x8xbf16>
    %c0_47 = arith.constant 0 : index
    %c3 = arith.constant 3 : index
    %c0_48 = arith.constant 0 : index
    %c0_49 = arith.constant 0 : index
    %67 = vector.load %arg6[%c0_47, %c3, %c0_48, %c0_49] : memref<1x4x8x8xbf16, #tpu.memory_space<vmem>>, vector<1x1x8x8xbf16>
    %68 = vector.shape_cast %67 : vector<1x1x8x8xbf16> to vector<8x8xbf16>
    %69 = vector.shape_cast %66 : vector<8x8xbf16> to vector<1x1x8x8xbf16>
    tpu.vector_store %arg6[%c0_47, %c3, %c0_48, %c0_49], %69 {strides = array<i32>} : memref<1x4x8x8xbf16, #tpu.memory_space<vmem>>, vector<1x1x8x8xbf16>,
    %70 = vector.extract_strided_slice %29 {offsets = [0, 56], sizes = [8, 8], strides = [1, 1]} : vector<8x96xbf16> to vector<8x8xbf16>
    %c0_50 = arith.constant 0 : index
    %c3_51 = arith.constant 3 : index
    %c0_52 = arith.constant 0 : index
    %c0_53 = arith.constant 0 : index
    %71 = vector.load %arg7[%c0_50, %c3_51, %c0_52, %c0_53] : memref<1x4x8x8xbf16, #tpu.memory_space<vmem>>, vector<1x1x8x8xbf16>
    %72 = vector.shape_cast %71 : vector<1x1x8x8xbf16> to vector<8x8xbf16>
    %73 = vector.shape_cast %70 : vector<8x8xbf16> to vector<1x1x8x8xbf16>
    tpu.vector_store %arg7[%c0_50, %c3_51, %c0_52, %c0_53], %73 {strides = array<i32>} : memref<1x4x8x8xbf16, #tpu.memory_space<vmem>>, vector<1x1x8x8xbf16>,
    %74 = vector.extract_strided_slice %29 {offsets = [0, 88], sizes = [8, 8], strides = [1, 1]} : vector<8x96xbf16> to vector<8x8xbf16>
    %c0_54 = arith.constant 0 : index
    %c3_55 = arith.constant 3 : index
    %c0_56 = arith.constant 0 : index
    %c0_57 = arith.constant 0 : index
    %75 = vector.load %arg8[%c0_54, %c3_55, %c0_56, %c0_57] : memref<1x4x8x8xbf16, #tpu.memory_space<vmem>>, vector<1x1x8x8xbf16>
    %76 = vector.shape_cast %75 : vector<1x1x8x8xbf16> to vector<8x8xbf16>
    %77 = vector.shape_cast %74 : vector<8x8xbf16> to vector<1x1x8x8xbf16>
    tpu.vector_store %arg8[%c0_54, %c3_55, %c0_56, %c0_57], %77 {strides = array<i32>} : memref<1x4x8x8xbf16, #tpu.memory_space<vmem>>, vector<1x1x8x8xbf16>,
    return
  }
  func.func @transform_0(%arg0: i32, %arg1: i32) -> (i32, i32, i32) {
    %c0_i32 = arith.constant 0 : i32
    %c0_i32_0 = arith.constant 0 : i32
    return %arg0, %arg1, %c0_i32 : i32, i32, i32
  }
  func.func @transform_1(%arg0: i32, %arg1: i32) -> (i32, i32) {
    %c0_i32 = arith.constant 0 : i32
    %c0_i32_0 = arith.constant 0 : i32
    %c0_i32_1 = arith.constant 0 : i32
    return %c0_i32, %c0_i32_0 : i32, i32
  }
  func.func @transform_2(%arg0: i32, %arg1: i32) -> (i32, i32) {
    %c0_i32 = arith.constant 0 : i32
    %c0_i32_0 = arith.constant 0 : i32
    %c0_i32_1 = arith.constant 0 : i32
    return %c0_i32, %c0_i32_0 : i32, i32
  }
  func.func @transform_3(%arg0: i32, %arg1: i32) -> (i32, i32) {
    %c0_i32 = arith.constant 0 : i32
    %c0_i32_0 = arith.constant 0 : i32
    %c0_i32_1 = arith.constant 0 : i32
    return %c0_i32, %c0_i32_0 : i32, i32
  }
  func.func @transform_4(%arg0: i32, %arg1: i32) -> (i32, i32, i32, i32) {
    %c0_i32 = arith.constant 0 : i32
    %c0_i32_0 = arith.constant 0 : i32
    %c0_i32_1 = arith.constant 0 : i32
    return %arg0, %c0_i32, %arg1, %c0_i32_0 : i32, i32, i32, i32
  }
  func.func @transform_5(%arg0: i32, %arg1: i32) -> (i32, i32, i32, i32) {
    %c0_i32 = arith.constant 0 : i32
    %c0_i32_0 = arith.constant 0 : i32
    %c0_i32_1 = arith.constant 0 : i32
    return %arg0, %c0_i32, %arg1, %c0_i32_0 : i32, i32, i32, i32
  }
  func.func @transform_6(%arg0: i32, %arg1: i32) -> (i32, i32, i32, i32) {
    %c0_i32 = arith.constant 0 : i32
    %c0_i32_0 = arith.constant 0 : i32
    %c0_i32_1 = arith.constant 0 : i32
    return %arg0, %c0_i32, %arg1, %c0_i32_0 : i32, i32, i32, i32
  }
}

</mosaic_0001>

<bundles_post_ra>
// kernel: tpu_custom_call.1
= control target key start
LH: loop header
LB: loop body
LE: loop exit
PB: predicated region body
PF: predicated region fallthrough
CT: control target
= control target key end

     0   :  { %s1394_s0 = inlined_call_operand.hbm [shape: f32[2,8,32], index: 0, kind: input, shape index: {}]   ;;  %s1395_s1 = inlined_call_operand.vmem [shape: f32[1,32], index: 1, kind: input, shape index: {}]   ;;  %s1396_s2 = inlined_call_operand.vmem [shape: f32[1,32], index: 2, kind: input, shape index: {}]   ;;  %s1397_s3 = inlined_call_operand.hbm [shape: bf16[32,96], index: 3, kind: input, shape index: {}]   ;;  %s1398_s4 = inlined_call_operand.hbm [shape: bf16[2,4,8,8], index: 4, kind: output, shape index: {0}]   ;;  %s1399_s5 = inlined_call_operand.hbm [shape: bf16[2,4,8,8], index: 5, kind: output, shape index: {1}]   ;;  %s1400_s6 = inlined_call_operand.hbm [shape: bf16[2,4,8,8], index: 6, kind: output, shape index: {2}]  }
   0x1   :  { %1405 = sst [smem:[#allocation17_spill]] %s1397_s3 }
   0x2   :  { %12 = vsyncpa [#allocation3], 0 }
   0x3   :  { %14 = vsyncpa [#allocation3 + $0x1], 0 }
   0x4   :  { %15 = vsyncpa [#allocation6], 0 }
   0x5   :  { %16 = vsyncpa [#allocation4], 0 }
   0x6   :  { %18 = vsyncpa [#allocation4 + $0x1], 0 }
   0x7   :  { %19 = vsyncpa [#allocation9], 0 }
   0x8   :  { %21 = vsyncpa [#allocation9 + $0x1], 0  ;;  %s1100_s21 = smov 0   ;;  %s1102_s22 = smov 0  }
   0x9   :  { %s1104_s23 = smov 0   ;;  %s1106_s24 = smov 0  }
   0xa   :  { %s1108_s25 = smov 0   ;;  %s1110_s26 = smov 0  }
   0xb LB: > { %1406 = sst [smem:[#allocation15_spill]] %s1038_s25  ;;  %s1131_s27 = sadd.s32 4294967295, %s1042_s26   ;;  %s1042_s26 = sphi %s1110_s26, %s27_s26   ;;  %s1038_s25 = sphi %s1108_s25, %s1423_s25   ;;  %s1034_s24 = sphi %s1106_s24, %s1422_s24   ;;  %s1030_s23 = sphi %s1104_s23, %s1426_s23   ;;  %s1026_s22 = sphi %s1102_s22, %s1425_s22   ;;  %s1022_s21 = sphi %s1100_s21, %s1424_s21  }
   0xc   : > { %s1401_s28 = sadd.s32 4294967294, %s1042_s26   ;;  %p61_p0 = scmp.ne.s32.totalorder %s1026_s22, %s1022_s21 }
   0xd   : > { %p1404_p1 = scmp.eq.s32.totalorder %s1131_s27, 0  ;;  %p156_p3 = scmp.eq.s32.totalorder %s1401_s28, 1 }
   0xe   : > { %p693_p5 = scmp.ge.s32.totalorder %s1042_s26, 1  ;;  %p219_p7 = scmp.lt.s32.totalorder %s1042_s26, 3 }
   0xf   : > { %p1142_p4 = por %p1404_p1, %p61_p0  ;;  %p1147_p6 = por %p156_p3, %p61_p0 }
  0x10   : > { %p1152_p8 = pnand %p693_p5, %p219_p7  ;;  %s1044_s8 = smov [#allocation5]  }
  0x11   : > { %s1408_s30 = scalar_select %p1147_p6, 1, 0 }
  0x12   : > { %s237_s9 = sshll.u32 %s1044_s8, 4  ;;  %p757_p9 = pneg %p1152_p8  ;;  %s238_s9 = int_to_ptr.vmem [resolvable:$true] %s237_s9 }
  0x13   : > { %s39_s11 = sadd.s32 1, %s1038_s25  ;;  %s859_s12 = scalar_lea.vmem %s238_s9, 256 }
  0x14   : > { %p1161_p11 = pnand %p757_p9, %p1404_p1  ;;  %p860_p13 = scmp.ne.s32.totalorder %s238_s9, %s859_s12 }
  0x15   : > { %p867_p5 = scmp.lt.s32.totalorder %s238_s9, %s238_s9  ;;  %p868_p7 = scmp.lt.s32.totalorder %s859_s12, %s859_s12 }
  0x16   : > { %p850_p12 = pneg %p1161_p11 }
  0x17   : > { %p869_p2 = por %p868_p7, %p867_p5 }
  0x18   : > { %p862_p0 = pnand %p860_p13, %p850_p12 }
  0x1a   : > { %p863_p3 = pneg %p862_p0 }
  0x1c   : > { %p870_p6 = pnand %p869_p2, %p863_p3 }
  0x1e   : > { %873 = shalt.err (!%p870_p6)
}
  0x1f   : > { %s1045_s13 = smov 64   ;;  %s1046_s14 = smov 4  }
  0x20   : > { %s1411_s3 = sld [smem:[#allocation17_spill]]  ;;  %p41_p2 = scmp.ge.s32.totalorder %s39_s11, 2 }
  0x21   : > { %s48_s17 = sadd.s32 1, %s1030_s23  ;;  %p55_p6 = scmp.ne.s32.totalorder %s1030_s23, %s1026_s22 }
  0x22   : > { %p56_p9 = scmp.eq.s32.totalorder %s1042_s26, 0  ;;  %s1428_s11 = smov (%p41_p2, %s39_s11), 0 }
  0x23   : > { %1412 = sst [smem:[#allocation16_spill]] %s1428_s11  ;;  %p1414_p13 = scmp.eq.s32.totalorder %s1131_s27, 1 }
  0x24   : > { %p1179_p12 = por %p56_p9, %p55_p6  ;;  %s43_s20 = ssub.s32 %s1038_s25, %s1428_s11 }
  0x25   : > { %p1185_p0 = por %p1414_p13, %p55_p6  ;;  %p776_p3 = scmp.lt.s32.totalorder %s1042_s26, 2 }
  0x26   : > { %760 = dma.hbm_to_vmem [thread:$0]  (!%p1161_p11), %s1411_s3, 256, %s238_s9, [#allocation6], %s1045_s13, %s1045_s13, %s1046_s14  }
  0x27   : > { %p46_p11 = scmp.eq.s32.totalorder %s43_s20, 0  ;;  %s251_s8 = sand.u32 1, %s1030_s23  }
  0x28   : > { %s696_s9 = sshll.u32 %s251_s8, 3  ;;  %s697_s12 = sshll.u32 %s1038_s25, 7 }
  0x29   : > { %s1194_s10 = scalar_select %p46_p11, %s1030_s23, %s48_s17  }
  0x2a   : > { %s261_s15 = scalar_lea.hbm %s1394_s0, %s697_s12  ;;  %s255_s16 = scalar_lea.vmem [#allocation2], %s696_s9 }
  0x2b   : > { %s263_s28 = sshll.u32 %s255_s16, 4  ;;  %p1202_p5 = pnand %p776_p3, %p1179_p12  ;;  %s264_s28 = int_to_ptr.vmem [resolvable:$true] %s263_s28 }
  0x2c   : > { %s252_s11 = scalar_lea.sflag [#allocation3], %s251_s8  ;;  %s887_s20 = scalar_lea.vmem %s264_s28, 128 }
  0x2d   : > { %p876_p7 = pneg %p1202_p5  ;;  %p888_p2 = scmp.ne.s32.totalorder %s264_s28, %s887_s20 }
  0x2e   : > { %s1047_s17 = smov [#allocation2]  }
  0x2f   : > { %p890_p6 = pnand %p888_p2, %p876_p7  ;;  %s892_s25 = sshll.u32 %s1047_s17, 4  ;;  %s893_s25 = int_to_ptr.vmem [resolvable:$false] %s892_s25 }
  0x30   : > { %s894_s12 = scalar_lea.vmem %s893_s25, 256  ;;  %p895_p13 = scmp.lt.s32.totalorder %s264_s28, %s893_s25 }
  0x31   : > { %p891_p9 = pneg %p890_p6  ;;  %p896_p11 = scmp.lt.s32.totalorder %s894_s12, %s887_s20 }
  0x33   : > { %p897_p10 = por %p896_p11, %p895_p13 }
  0x35   : > { %p898_p1 = pnand %p897_p10, %p891_p9 }
  0x37   : > { %901 = shalt.err (!%p898_p1)
}
  0x38   : > { %764 = dma.hbm_to_vmem [thread:$0]  (!%p1202_p5), %s261_s15, 128, %s264_s28, %s252_s11  }
  0x39   : > { %272 = sbr.rel (%p1152_p8) target bundleno = 755 (0x2f3), region = 36  ;;  %s1213_s18 = sand.u32 (!%p1152_p8), 1, %s1026_s22  }
  0x3a   : > { %s699_s8 = sshll.u32 (!%p1152_p8), %s1213_s18, 3  ;;  %s275_s9 = scalar_lea.sflag (!%p1152_p8), [#allocation3], %s1213_s18 }
  0x3b   : > { %s278_s13 = scalar_lea.vmem (!%p1152_p8), [#allocation2], %s699_s8 }
  0x3e   : > { %1005 = dma.done.wait (%p1142_p4), %s275_s9, 128  }
  0x3f   : > { %1007 = vsyncadd (%p1142_p4), %s275_s9, 4294967168  ;;  %p1417_p1 = scmp.eq.s32.totalorder %s1131_s27, 0 }
  0x41   : > { %1009 = dma.done.wait (%p1417_p1), [#allocation6], 256   ;;  %p1418_p10 = pmov %p1417_p1 }
  0x42   : > { %vm325_vm0 = vcmask 261120   ;;  %v322_v0 = vld [vmem:[%s278_s13] sm:$0xff]  ;;  %v844_v7 = vld [vmem:[#allocation5 + $0x8] sm:$0xff]   ;;  %v1048_v8 = vmov 0.0   ;;  %vm1049_vm1 = vmmov 0   ;;  %v845_v9 = vld [vmem:[#allocation5] sm:$0xff]  }
  0x43   : > { %1011 = vsyncadd (%p1418_p10), [#allocation6], 4294967040  ;;  %v326_v1 = vsel %vm325_vm0, %v322_v0, 0.0  ;;  %737 = vmatprep.subr.bf16.mxu0 %v1048_v8  ;;  %741 = vmatprep.mubr.msk.bf16.mxu0 %vm1049_vm1, %v1048_v8  ;;  %v704_v14 = vld [vmem:[%s1395_s1] ss:$0 sm:$0xff]  ;;  %s1235_s7 = sshll.u32 %s1213_s18, 4 }
  0x44   : > { %327 = vadd.xlane.f32.xlu0 %v326_v1  ;;  %738 = vmatpush3.bf16.msra.mxu0 %v844_v7  ;;  %v705_v16 = vld [vmem:[%s1396_s2] ss:$0 sm:$0xff]  ;;  %vm415_vm2 = vcmask 60416   ;;  %s1050_s11 = smov 80   ;;  %s1051_s14 = smov 96  }
  0x45   : > { %739 = vmatprep.subr.bf16.mxu0 %v1048_v8  ;;  %s1238_s15 = scalar_lea.vmem [#allocation7], %s1235_s7  ;;  %s1052_s16 = smov 104  }
  0x46   : > { %s1053_s20 = smov 88   ;;  %s1054_s17 = smov 72  }
  0x47   : > { %s1055_s12 = smov 64   ;;  %s1056_s8 = smov 120  }
  0x48   : > { %740 = vmatpush3.bf16.msra.mxu0 %v845_v9  ;;  %s1057_s9 = smov 56   ;;  %s1058_s13 = smov 112  }
  0x49   : > { %s1059_s3 = smov 48   ;;  %s1060_s25 = smov 40  }
  0x4a   : > { %s313_s28 = scalar_lea.vmem [#allocation8], %s1235_s7 }
  0x4b   : > { %s515_s29 = sshll.u32 %s313_s28, 4  ;;  %s1253_s29 = int_to_ptr.vmem [resolvable:$true] %s515_s29 }
  0xcd   : > { %v328_v2 = vpop.xlane.xlu0 %327 }
  0xce   : > { %v330_v3 = vmul.f32 0.03125, %v328_v2 }
  0xd0   : > { %v331_v4 = vsub.f32 %v322_v0, %v330_v3 }
  0xd2   : > { %v332_v5 = vmul.f32 %v331_v4, %v331_v4 }
  0xd4   : > { %v333_v6 = vsel %vm325_vm0, %v332_v5, 0.0 }
  0xd5   : > { %334 = vadd.xlane.f32.xlu0 %v333_v6 }
 0x15e   : > { %v335_v10 = vpop.xlane.xlu0 %334 }
 0x15f   : > { %v336_v11 = vmul.f32 0.03125, %v335_v10 }
 0x161   : > { %v337_v12 = vadd.f32 1e-05, %v336_v11 }
 0x163   : > { %846 = vrsqrt.f32 %v337_v12 }
 0x170   : > { %v847_v13 = vpop.eup %846 }
 0x171   : > { %v339_v15 = vmul.f32 %v847_v13, %v331_v4 }
 0x173   : > { %v346_v17 = vmul.f32 %v704_v14, %v339_v15 }
 0x175   : > { %v353_v18 = vadd.f32 %v705_v16, %v346_v17 }
 0x177   : > { %v354_v19 = vpack.c.bf16 %v353_v18, %v353_v18 }
 0x179   : > { %742 = vmatmul.mubr.msk.bf16.vlgmr.msra.gmra.mxu0 %vm325_vm0, %v354_v19 }
 0x239   : > { %v408_v20 = vpop.f32.mrf.mxu0 }
 0x23a   : > { %v414_v21 = vpack.c.bf16 %v408_v20, %v408_v20 }
 0x23b   : > { %v743_v22 = vpop.f32.mrf.mxu0 }
 0x23c   : > { %448 = vrot.lane.b32.xlu0 %v414_v21, %s1050_s11  ;;  %420 = vrot.lane.b32.xlu1 %v414_v21, %s1051_s14  ;;  %416 = vst.msk [vmem:[%s1238_s15] sm:$0xf] %vm415_vm2, %v414_v21  ;;  %s478_s11 = sand.u32 1, %s1131_s27   ;;  %s1248_s14 = sshll.u32 %s1034_s24, 8 }
 0x23d   : > { %v411_v23 = vpop.f32.mrf.mxu0  ;;  %s1262_s24 = scalar_lea.sflag [#allocation9], %s478_s11  ;;  %s902_s27 = scalar_lea.vmem %s1253_s29, 256 }
 0x23e   : > { %p903_p4 = scmp.ne.s32.totalorder %s1253_s29, %s902_s27 }
 0x23f   : > { %v744_v24 = vpop.f32.mrf.mxu0 }
 0x240   : > { %458 = vrot.lane.b32.xlu0 %v414_v21, %s1052_s16  ;;  %433 = vrot.lane.b32.xlu1 %v414_v21, %s1053_s20  ;;  %p904_p8 = pnand %p903_p4, %p1185_p0 }
 0x242   : > { %p905_p12 = pneg %p904_p8 }
 0x244   : > { %463 = vrot.lane.b32.xlu1 %v414_v21, %s1054_s17  ;;  %s1259_s17 = scalar_lea.hbm %s1399_s5, %s1248_s14 }
 0x248   : > { %424 = vrot.lane.b32.xlu1 %v414_v21, %s1055_s12 }
 0x24c   : > { %428 = vrot.lane.b32.xlu1 %v414_v21, %s1056_s8  ;;  %s1061_s8 = smov [#allocation8]  }
 0x250   : > { %438 = vrot.lane.b32.xlu1 %v414_v21, %s1057_s9  ;;  %s906_s9 = sshll.u32 %s1061_s8, 4  ;;  %s907_s9 = int_to_ptr.vmem [resolvable:$false] %s906_s9 }
 0x251   : > { %p909_p3 = scmp.lt.s32.totalorder %s1253_s29, %s907_s9 }
 0x254   : > { %443 = vrot.lane.b32.xlu1 %v414_v21, %s1058_s13  ;;  %s908_s13 = scalar_lea.vmem %s907_s9, 512 }
 0x255   : > { %p910_p5 = scmp.lt.s32.totalorder %s908_s13, %s902_s27 }
 0x257   : > { %p911_p7 = por %p910_p5, %p909_p3 }
 0x258   : > { %453 = vrot.lane.b32.xlu1 %v414_v21, %s1059_s3 }
 0x259   : > { %p912_p2 = pnand %p911_p7, %p905_p12 }
 0x25c   : > { %468 = vrot.lane.b32.xlu1 %v414_v21, %s1060_s25 }
 0x2ae   : > { %v449_v25 = vpop.permute.xlu0 %448  ;;  %v421_v26 = vpop.permute.xlu1 %420 }
 0x2af   : > { %714 = vst.msk [vmem:[%s313_s28 + $0x8] sm:$0xf] %vm415_vm2, %v449_v25  ;;  %423 = vst.msk [vmem:[%s313_s28] sm:$0xf] %vm415_vm2, %v421_v26 }
 0x2b2   : > { %v459_v27 = vpop.permute.xlu0 %458  ;;  %v434_v28 = vpop.permute.xlu1 %433 }
 0x2b3   : > { %716 = vst.msk [vmem:[%s1238_s15 + $0xc] sm:$0xf] %vm415_vm2, %v459_v27  ;;  %711 = vst.msk [vmem:[%s313_s28 + $0x4] sm:$0xf] %vm415_vm2, %v434_v28 }
 0x2b6   : > { %v464_v29 = vpop.permute.xlu1 %463 }
 0x2b7   : > { %717 = vst.msk [vmem:[%s313_s28 + $0xc] sm:$0xf] %vm415_vm2, %v464_v29 }
 0x2b8   : > { %915 = shalt.err (!%p912_p2)
}
 0x2b9   : > { %s916_s3 = scalar_lea.hbm %s1259_s17, 256  ;;  %s920_s11 = scalar_lea.hbm %s1399_s5, 512 }
 0x2ba   : > { %p917_p6 = scmp.ne.s32.totalorder %s1259_s17, %s916_s3  ;;  %p921_p11 = scmp.lt.s32.totalorder %s1259_s17, %s1399_s5 }
 0x2bb   : > { %p922_p1 = scmp.lt.s32.totalorder %s920_s11, %s916_s3 }
 0x2bc   : > { %p918_p9 = pnand %p917_p6, %p1185_p0 }
 0x2bd   : > { %p923_p10 = por %p922_p1, %p921_p11 }
 0x2be   : > { %p919_p13 = pneg %p918_p9 }
 0x2c0   : > { %p924_p4 = pnand %p923_p10, %p919_p13 }
 0x2c2   : > { %927 = shalt.err (!%p924_p4)
}
 0x2c3   : > { %s1062_s27 = smov 4   ;;  %v425_v30 = vpop.permute.xlu1 %424  ;;  %s1289_s8 = scalar_lea.vmem [#allocation10], %s1235_s7 }
 0x2c4   : > { %752 = dma.vmem_to_hbm [thread:$0]  (%p1185_p0), %s1253_s29, 256, %s1259_s17, %s1262_s24, %s1055_s12, %s1055_s12, %s1062_s27  }
 0x2c5   : > { %427 = vst.msk [vmem:[%s1289_s8] sm:$0xf] %vm415_vm2, %v425_v30  ;;  %s498_s9 = sshll.u32 %s1238_s15, 4  ;;  %s1304_s7 = scalar_lea.hbm %s1398_s4, %s1248_s14  ;;  %s1298_s9 = int_to_ptr.vmem [resolvable:$true] %s498_s9 }
 0x2c6   : > { %s474_s29 = scalar_lea.sflag [#allocation4], %s1213_s18  ;;  %s928_s17 = scalar_lea.vmem %s1298_s9, 256 }
 0x2c7   : > { %v429_v31 = vpop.permute.xlu1 %428  ;;  %p929_p8 = scmp.ne.s32.totalorder %s1298_s9, %s928_s17  ;;  %s1063_s25 = smov [#allocation7]  }
 0x2c8   : > { %710 = vst.msk [vmem:[%s1238_s15 + $0x4] sm:$0xf] %vm415_vm2, %v429_v31  ;;  %s932_s28 = sshll.u32 %s1063_s25, 4  ;;  %s933_s28 = int_to_ptr.vmem [resolvable:$false] %s932_s28 }
 0x2c9   : > { %p930_p12 = pnand %p929_p8, %p1185_p0  ;;  %s934_s11 = scalar_lea.vmem %s933_s28, 512 }
 0x2ca   : > { %p935_p5 = scmp.lt.s32.totalorder %s1298_s9, %s933_s28  ;;  %p936_p7 = scmp.lt.s32.totalorder %s934_s11, %s928_s17 }
 0x2cb   : > { %v439_v32 = vpop.permute.xlu1 %438  ;;  %p931_p3 = pneg %p930_p12 }
 0x2cc   : > { %712 = vst.msk [vmem:[%s1289_s8 + $0x4] sm:$0xf] %vm415_vm2, %v439_v32  ;;  %p937_p2 = por %p936_p7, %p935_p5 }
 0x2ce   : > { %p938_p6 = pnand %p937_p2, %p931_p3 }
 0x2cf   : > { %v444_v33 = vpop.permute.xlu1 %443 }
 0x2d0   : > { %713 = vst.msk [vmem:[%s1238_s15 + $0x8] sm:$0xf] %vm415_vm2, %v444_v33 }
 0x2d1   : > { %941 = shalt.err (!%p938_p6)
}
 0x2d2   : > { %s942_s15 = scalar_lea.hbm %s1304_s7, 256  ;;  %s946_s20 = scalar_lea.hbm %s1398_s4, 512 }
 0x2d3   : > { %p943_p9 = scmp.ne.s32.totalorder %s1304_s7, %s942_s15  ;;  %p947_p1 = scmp.lt.s32.totalorder %s1304_s7, %s1398_s4 }
 0x2d4   : > { %p948_p10 = scmp.lt.s32.totalorder %s946_s20, %s942_s15 }
 0x2d5   : > { %p944_p13 = pnand %p943_p9, %p1185_p0 }
 0x2d6   : > { %p949_p4 = por %p948_p10, %p947_p1 }
 0x2d7   : > { %p945_p11 = pneg %p944_p13 }
 0x2d9   : > { %p950_p8 = pnand %p949_p4, %p945_p11 }
 0x2db   : > { %953 = shalt.err (!%p950_p8)
}
 0x2dc   : > { %751 = dma.vmem_to_hbm [thread:$0]  (%p1185_p0), %s1298_s9, 256, %s1304_s7, %s474_s29, %s1055_s12, %s1055_s12, %s1062_s27   ;;  %v454_v34 = vpop.permute.xlu1 %453 }
 0x2dd   : > { %s532_s17 = sshll.u32 %s1289_s8, 4  ;;  %715 = vst.msk [vmem:[%s1289_s8 + $0x8] sm:$0xf] %vm415_vm2, %v454_v34  ;;  %s1341_s11 = scalar_lea.hbm %s1400_s6, %s1248_s14  ;;  %s1335_s17 = int_to_ptr.vmem [resolvable:$true] %s532_s17 }
 0x2de   : > { %s954_s15 = scalar_lea.vmem %s1335_s17, 256  ;;  %s1064_s9 = smov [#allocation10]  }
 0x2df   : > { %p955_p12 = scmp.ne.s32.totalorder %s1335_s17, %s954_s15  ;;  %s958_s7 = sshll.u32 %s1064_s9, 4  ;;  %s959_s7 = int_to_ptr.vmem [resolvable:$false] %s958_s7 }
 0x2e0   : > { %v469_v35 = vpop.permute.xlu1 %468  ;;  %s960_s29 = scalar_lea.vmem %s959_s7, 512  ;;  %p961_p7 = scmp.lt.s32.totalorder %s1335_s17, %s959_s7 }
 0x2e1   : > { %718 = vst.msk [vmem:[%s1289_s8 + $0xc] sm:$0xf] %vm415_vm2, %v469_v35  ;;  %p956_p3 = pnand %p955_p12, %p1185_p0  ;;  %p962_p2 = scmp.lt.s32.totalorder %s960_s29, %s954_s15 }
 0x2e3   : > { %p957_p5 = pneg %p956_p3  ;;  %p963_p6 = por %p962_p2, %p961_p7 }
 0x2e5   : > { %p964_p9 = pnand %p963_p6, %p957_p5 }
 0x2e7   : > { %967 = shalt.err (!%p964_p9)
}
 0x2e8   : > { %s968_s14 = scalar_lea.hbm %s1341_s11, 256  ;;  %s972_s16 = scalar_lea.hbm %s1400_s6, 512 }
 0x2e9   : > { %p969_p13 = scmp.ne.s32.totalorder %s1341_s11, %s968_s14  ;;  %p973_p10 = scmp.lt.s32.totalorder %s1341_s11, %s1400_s6 }
 0x2ea   : > { %p974_p4 = scmp.lt.s32.totalorder %s972_s16, %s968_s14 }
 0x2eb   : > { %p970_p11 = pnand %p969_p13, %p1185_p0 }
 0x2ec   : > { %p975_p8 = por %p974_p4, %p973_p10 }
 0x2ed   : > { %p971_p1 = pneg %p970_p11 }
 0x2ef   : > { %p976_p12 = pnand %p975_p8, %p971_p1 }
 0x2f1   : > { %979 = shalt.err (!%p976_p12)
}
 0x2f2   : > { %753 = dma.vmem_to_hbm [thread:$0]  (%p1185_p0), %s1335_s17, 256, %s1341_s11, %s1262_s24, %s1055_s12, %s1055_s12, %s1062_s27  }
 0x2f3 PF: > { %s547_s3 = sand.u32 1, %s1022_s21   ;;  %p1419_p3 = scmp.ne.s32.totalorder %s1408_s30, 0 }
 0x2f4   : > { %p1420_p5 = scmp.ge.s32.totalorder %s1042_s26, 2  ;;  %s548_s25 = scalar_lea.sflag [#allocation4], %s547_s3 }
 0x2f6   : > { %p766_p7 = pnand %p1420_p5, %p1419_p3 }
 0x2f8   : > { %p767_p2 = pneg %p766_p7 }
 0x2fa   : > { %1013 = dma.done.wait (%p767_p2), %s548_s25, 256  }
 0x2fb   : > { %1015 = vsyncadd (%p767_p2), %s548_s25, 4294967040  ;;  %s1421_s19 = sadd.s32 4294967294, %s1042_s26  }
 0x2fc   : > { %s556_s28 = sand.u32 1, %s1421_s19  }
 0x2fd   : > { %s557_s15 = scalar_lea.sflag [#allocation9], %s556_s28 }
 0x2fe   : > { %1017 = dma.done.wait (%p767_p2), %s557_s15, 512  }
 0x2ff   : > { %1019 = vsyncadd (%p767_p2), %s557_s15, 4294966784  ;;  %s27_s26 = sadd.s32 1, %s1042_s26   ;;  %s1422_s24 = sld [smem:[#allocation15_spill]] }
 0x300   : > { %p24_p0 = scmp.ge.s32.totalorder %s27_s26, 4   ;;  %s1423_s25 = sld [smem:[#allocation16_spill]] }
 0x301   : > { %s1424_s21 = smov %s1026_s22  ;;  %s1425_s22 = smov %s1030_s23 }
 0x302   : > { %s1426_s23 = smov %s1194_s10  ;;  %26 = sbr.rel (!%p24_p0) target bundleno = 11 (0xb), region = 126 }
 0x307   :  { %571 = vsyncpa [#allocation3], 1 }
 0x308   :  { %573 = vsyncpa [#allocation3 + $0x1], 1 }
 0x309   :  { %574 = vsyncpa [#allocation6], 1 }
 0x30a   :  { %575 = vsyncpa [#allocation4], 1 }
 0x30b   :  { %577 = vsyncpa [#allocation4 + $0x1], 1 }
 0x30c   :  { %578 = vsyncpa [#allocation9], 1 }
 0x30d   :  { %580 = vsyncpa [#allocation9 + $0x1], 1 }

</bundles_post_ra>
